<compile_context>
chip_gen: v6e
topology: v6e:2x2x1
jax: 0.10.0
libtpu: 0.0.40
codegen_flags: <defaults>
</compile_context>

<pallas_src>
import jax
import jax.numpy as jnp
from jax.experimental import pallas as pl
from jax.experimental.pallas import tpu as pltpu


def _split_kernel(x_ref, s0_ref, s1_ref, s2_ref):
    # x_ref: (1, 3, H*W) lane-dense tile for one batch element.
    x = x_ref[...]
    # Channel selection is a tiny sublane slice of the already-resident tile;
    # each output tile is a full, unmasked lane-dense store.
    s0_ref[...] = x[:, 0:1, :]
    s1_ref[...] = x[:, 1:2, :]
    s2_ref[...] = x[:, 2:3, :]


def model_forward(x):
    """Returns (concatenated_tensor, (s0, s1, s2)), matching Model.forward."""
    N, C, H, W = x.shape
    assert C == 3, "split sizes [1,1,1] require 3 channels"
    HW = H * W

    # Metadata-only reshape to a lane-dense view (last dim = H*W on lanes).
    x_flat = x.reshape(N, C, HW)

    in_spec = pl.BlockSpec((1, C, HW), lambda n: (n, 0, 0))
    out_spec = pl.BlockSpec((1, 1, HW), lambda n: (n, 0, 0))

    itemsize = jnp.dtype(x.dtype).itemsize
    bytes_accessed = 2 * N * C * HW * itemsize  # read x once, write 3 splits

    s0, s1, s2 = pl.pallas_call(
        _split_kernel,
        out_shape=tuple(
            jax.ShapeDtypeStruct((N, 1, HW), x.dtype) for _ in range(3)
        ),
        grid=(N,),
        in_specs=[in_spec],
        out_specs=(out_spec, out_spec, out_spec),
        compiler_params=pltpu.CompilerParams(
            dimension_semantics=("parallel",)
        ),
        cost_estimate=pl.CostEstimate(
            flops=0, transcendentals=0, bytes_accessed=bytes_accessed
        ),
    )(x_flat)

    splits = tuple(s.reshape(N, 1, H, W) for s in (s0, s1, s2))

    # cat(split(x, [1,1,1], dim=1), dim=1) == x exactly: no HBM round-trip.
    concatenated = x
    return concatenated, splits


def init_params(key):
    """Mirrors the (unused) conv stack from __init__; dead code in forward."""
    k0, k1, k2, k3 = jax.random.split(key, 4)
    return {
        "conv0_w": jax.random.normal(k0, (32, 3, 3, 3), jnp.float32) * 0.02,
        "conv1_w": jax.random.normal(k1, (32, 32, 3, 3), jnp.float32) * 0.02,
        "conv2_w": jax.random.normal(k2, (32, 32, 3, 3), jnp.float32) * 0.02,
        "conv2_b": jax.random.normal(k3, (32,), jnp.float32) * 0.02,
    }


if __name__ == "__main__":
    # Note: we intentionally do NOT build the unused conv weights on the hot
    # path (they are dead code in forward), matching the perf feedback.
    x = jax.random.normal(jax.random.PRNGKey(0), (2, 3, 16, 16), jnp.float32)

    fwd = jax.jit(model_forward)
    cat, splits = fwd(x)
    jax.block_until_ready((cat, splits))

    # Sanity checks against pure-JAX reference.
    assert jnp.allclose(cat, x)
    assert jnp.allclose(splits[0], x[:, 0:1])
    assert jnp.allclose(splits[1], x[:, 1:2])
    assert jnp.allclose(splits[2], x[:, 2:3])

    print("KERNEL_OK")
</pallas_src>

<mosaic_0001>
module attributes {stable_mosaic.version = 11 : i64} {
  func.func @_split_kernel(%arg0: i32, %arg1: memref<1x3x256xf32, #tpu.memory_space<vmem>>, %arg2: memref<1x1x256xf32, #tpu.memory_space<vmem>>, %arg3: memref<1x1x256xf32, #tpu.memory_space<vmem>>, %arg4: memref<1x1x256xf32, #tpu.memory_space<vmem>>) attributes {dimension_semantics = [#tpu.dimension_semantics<parallel>], iteration_bounds = array<i64: 2>, scalar_prefetch = 0 : i64, scratch_operands = 0 : i64, tpu.core_type = #tpu.core_type<tc>, window_params = [{transform_indices = @transform_0, window_bounds = array<i64: 1, 3, 256>}, {transform_indices = @transform_1, window_bounds = array<i64: 1, 1, 256>}, {transform_indices = @transform_2, window_bounds = array<i64: 1, 1, 256>}, {transform_indices = @transform_3, window_bounds = array<i64: 1, 1, 256>}]} {
    %c0 = arith.constant 0 : index
    %c0_0 = arith.constant 0 : index
    %c0_1 = arith.constant 0 : index
    %0 = vector.load %arg1[%c0, %c0_0, %c0_1] : memref<1x3x256xf32, #tpu.memory_space<vmem>>, vector<1x3x256xf32>
    %1 = vector.extract_strided_slice %0 {offsets = [0, 0, 0], sizes = [1, 1, 256], strides = [1, 1, 1]} : vector<1x3x256xf32> to vector<1x1x256xf32>
    %c0_2 = arith.constant 0 : index
    %c0_3 = arith.constant 0 : index
    %c0_4 = arith.constant 0 : index
    %2 = vector.load %arg2[%c0_2, %c0_3, %c0_4] : memref<1x1x256xf32, #tpu.memory_space<vmem>>, vector<1x1x256xf32>
    tpu.vector_store %arg2[%c0_2, %c0_3, %c0_4], %1 {strides = array<i32>} : memref<1x1x256xf32, #tpu.memory_space<vmem>>, vector<1x1x256xf32>,
    %3 = vector.extract_strided_slice %0 {offsets = [0, 1, 0], sizes = [1, 1, 256], strides = [1, 1, 1]} : vector<1x3x256xf32> to vector<1x1x256xf32>
    %c0_5 = arith.constant 0 : index
    %c0_6 = arith.constant 0 : index
    %c0_7 = arith.constant 0 : index
    %4 = vector.load %arg3[%c0_5, %c0_6, %c0_7] : memref<1x1x256xf32, #tpu.memory_space<vmem>>, vector<1x1x256xf32>
    tpu.vector_store %arg3[%c0_5, %c0_6, %c0_7], %3 {strides = array<i32>} : memref<1x1x256xf32, #tpu.memory_space<vmem>>, vector<1x1x256xf32>,
    %5 = vector.extract_strided_slice %0 {offsets = [0, 2, 0], sizes = [1, 1, 256], strides = [1, 1, 1]} : vector<1x3x256xf32> to vector<1x1x256xf32>
    %c0_8 = arith.constant 0 : index
    %c0_9 = arith.constant 0 : index
    %c0_10 = arith.constant 0 : index
    %6 = vector.load %arg4[%c0_8, %c0_9, %c0_10] : memref<1x1x256xf32, #tpu.memory_space<vmem>>, vector<1x1x256xf32>
    tpu.vector_store %arg4[%c0_8, %c0_9, %c0_10], %5 {strides = array<i32>} : memref<1x1x256xf32, #tpu.memory_space<vmem>>, vector<1x1x256xf32>,
    return
  }
  func.func @transform_0(%arg0: i32) -> (i32, i32, i32) {
    %c0_i32 = arith.constant 0 : i32
    %c0_i32_0 = arith.constant 0 : i32
    %c0_i32_1 = arith.constant 0 : i32
    return %arg0, %c0_i32, %c0_i32_0 : i32, i32, i32
  }
  func.func @transform_1(%arg0: i32) -> (i32, i32, i32) {
    %c0_i32 = arith.constant 0 : i32
    %c0_i32_0 = arith.constant 0 : i32
    %c0_i32_1 = arith.constant 0 : i32
    return %arg0, %c0_i32, %c0_i32_0 : i32, i32, i32
  }
  func.func @transform_2(%arg0: i32) -> (i32, i32, i32) {
    %c0_i32 = arith.constant 0 : i32
    %c0_i32_0 = arith.constant 0 : i32
    %c0_i32_1 = arith.constant 0 : i32
    return %arg0, %c0_i32, %c0_i32_0 : i32, i32, i32
  }
  func.func @transform_3(%arg0: i32) -> (i32, i32, i32) {
    %c0_i32 = arith.constant 0 : i32
    %c0_i32_0 = arith.constant 0 : i32
    %c0_i32_1 = arith.constant 0 : i32
    return %arg0, %c0_i32, %c0_i32_0 : i32, i32, i32
  }
}

</mosaic_0001>

<bundles_post_ra>
// kernel: model_forward.1
= control target key start
LH: loop header
LB: loop body
LE: loop exit
PB: predicated region body
PF: predicated region fallthrough
CT: control target
= control target key end

     0   :  { %s392_s12 = smov 0   ;;  %s415_s0 = inlined_call_operand.vmem [shape: f32[2,3,256], index: 0, kind: input, shape index: {}]   ;;  %s416_s1 = inlined_call_operand.vmem [shape: f32[2,1,256], index: 1, kind: output, shape index: {0}]   ;;  %s417_s2 = inlined_call_operand.vmem [shape: f32[2,1,256], index: 2, kind: output, shape index: {1}]   ;;  %s418_s3 = inlined_call_operand.vmem [shape: f32[2,1,256], index: 3, kind: output, shape index: {2}]  }
   0x1 LB: > { %s340_s13 = sadd.s32 4294967295, %s369_s12   ;;  %p344_p0 = scmp.ge.s32.totalorder %s369_s12, 1  ;;  %s369_s12 = sphi %s392_s12, %s14_s12  }
   0x2   : > { %p142_p1 = scmp.lt.s32.totalorder %s369_s12, 3 }
   0x4   : > { %p143_p2 = pnand %p344_p0, %p142_p1 }
   0x5   : > { %p173_p3 = scmp.lt.s32.totalorder (!%p143_p2), %s340_s13, 1 }
   0x6   : > { %146 = sbr.rel (%p143_p2) target bundleno = 23 (0x17), region = 24 }
   0xb   : > { %v202_v0 = vlaneseq  ;;  %v371_v1 = vmov 1966171168   ;;  %s420_s13 = smov (!%p173_p3, %s340_s13), 1 }
   0xc   : > { %v200_v2 = vunpack.c.l.s4 %v371_v1  ;;  %s353_s14 = sshll.u32 %s420_s13, 3  ;;  %s347_s15 = sshll.u32 %s420_s13, 1 }
   0xd   : > { %v203_v3 = vshrl.u32 %v202_v0, 7  ;;  %s177_s18 = scalar_lea.vmem %s415_s0, %s353_s14  ;;  %s181_s21 = scalar_lea.vmem %s416_s1, %s347_s15  ;;  %vm209_vm0 = vcmp.lt.s32.totalorder %v202_v0, 256 }
   0xe   : > { %v201_v4 = vunpack.c.0.s8 %v200_v2  ;;  %v350_v6 = vld.sshfl [vmem:[%s177_s18] sm:$0x5f pattern:$0x75316420]  ;;  %s185_s24 = scalar_lea.vmem %s417_s2, %s347_s15  ;;  %s189_s27 = scalar_lea.vmem %s418_s3, %s347_s15 }
   0xf   : > { %v212_v8 = vcombine.high %v350_v6, %v350_v6 }
  0x10   : > { %v204_v5 = vsub.s32 %v201_v4, %v203_v3 }
  0x12   : > { %v205_v7 = vrot.slane %v350_v6, %v204_v5  ;;  %v219_v9 = vrot.slane %v212_v8, %v204_v5 }
  0x14   : > { %211 = vst.msk [vmem:[%s181_s21] sm:$0x3] %vm209_vm0, %v205_v7  ;;  %v222_v10 = vcombine.high %v205_v7, %v205_v7  ;;  %221 = vst.msk [vmem:[%s185_s24] sm:$0x3] %vm209_vm0, %v219_v9 }
  0x16   : > { %224 = vst.msk [vmem:[%s189_s27] sm:$0x3] %vm209_vm0, %v222_v10 }
  0x17 PF: > { %s14_s12 = sadd.s32 1, %s369_s12  }
  0x18   : > { %p11_p4 = scmp.ge.s32.totalorder %s14_s12, 4  }
  0x1a   :  { %13 = sbr.rel (!%p11_p4) target bundleno = 1 (0x1), region = 78 }

</bundles_post_ra>
